<compile_context>
chip_gen: v5e
topology: v5e:2x2
jax: 0.10.0
libtpu: 0.0.40
codegen_flags: <defaults>
</compile_context>

<pallas_src>
import jax
import jax.numpy as jnp
from jax.experimental import pallas as pl
from jax.experimental.pallas import tpu as pltpu


def _round_up(n, m):
    return ((n + m - 1) // m) * m


def mlp_kernel(xt_ref,
               w1t_ref, b1_ref,
               w2t_ref, b2_ref,
               w3t_ref, b3_ref,
               w4t_ref, b4_ref,
               w5_ref, b5_ref,
               o_ref):
    """Fused 5-layer MLP on one (features x TB) batch tile.

    xt_ref:  (input_dim, TB)                batch on lanes
    wNt_ref: (out_features, in_features)    bf16 for the MXU layers (2-4); layer-1 weight
             is f32 (VPU path); last weight is (in_features, 1) f32 when out_dim == 1.
    bN_ref:  (out_features, 1)              f32
    o_ref:   (out_dim, TB)                  f32
    """
    xt = xt_ref[...]                               # (in_dim, TB) f32
    in_dim = xt.shape[0]

    # ---- Layer 1: contraction dim is tiny (=2) -> VPU outer products, no MXU. ----
    # Bias folded into the first accumulator term (saves one full (H1, TB) VPU add).
    w1t = w1t_ref[...]                             # (H1, in_dim) f32
    if in_dim <= 8:
        acc = b1_ref[...] + w1t[:, 0:1] * xt[0:1, :]        # (H1,1)+(H1,1)*(1,TB)
        for k in range(1, in_dim):
            acc = acc + w1t[:, k:k + 1] * xt[k:k + 1, :]
    else:
        acc = jnp.dot(w1t, xt, preferred_element_type=jnp.float32) + b1_ref[...]
    h = jnp.maximum(acc, 0.0)                      # (H1, TB) f32

    # ---- Layers 2-4: bf16 MXU matmuls, f32 accumulation, f32 bias + ReLU on the VPU. ----
    # TODO(synk): on v6e/v7x, benchmark layer 4 (32->16) as VPU outer products vs. MXU.
    for wt_ref, b_ref in ((w2t_ref, b2_ref), (w3t_ref, b3_ref), (w4t_ref, b4_ref)):
        z = jnp.dot(wt_ref[...], h.astype(wt_ref.dtype),
                    preferred_element_type=jnp.float32) + b_ref[...]
        h = jnp.maximum(z, 0.0)

    # ---- Layer 5: N = out_dim = 1 -> VPU multiply + sublane reduce (no MXU). ----
    out_dim = o_ref.shape[0]
    wl = w5_ref[...]
    if out_dim == 1:
        out = jnp.sum(h * wl, axis=0, keepdims=True)                  # (1, TB)
    else:
        out = jnp.dot(wl, h.astype(wl.dtype),
                      preferred_element_type=jnp.float32)             # (out_dim, TB)
    o_ref[...] = (out + b5_ref[...]).astype(o_ref.dtype)


def point_model_forward(x, params, *, block_b=2048, feature_major=False):
    """Forward pass of PointModel.

    x:      (B, input_dim) float32, or (input_dim, B) if feature_major=True (avoids the
            wrapper-side transpose copy).
    params: list of (W_(in,out), b_(1,out)) float32 pairs.
    Returns (B, out_dim) float32.
    """
    if feature_major:
        x_t = x
        in_dim, B = x_t.shape
    else:
        B, in_dim = x.shape
        x_t = x.T                                  # (in_dim, B): batch on lanes

    out_dim = params[-1][0].shape[1]
    n_layers = len(params)

    # Lane-dense batch tile (multiple of 128). v7x-aware: aim for >= 2 grid steps so both
    # TensorCores get work; cap at block_b (default 2048 keeps f32 intermediates small
    # enough for v5e's 16 MiB default scoped VMEM).
    block_b_eff = max(128, (block_b // 128) * 128)
    TB = max(128, min(block_b_eff, _round_up(pl.cdiv(B, 2), 128)))
    B_pad = _round_up(B, TB)
    if B_pad != B:
        # Padded columns are zero and sliced off below (skipped when B % TB == 0).
        x_t = jnp.pad(x_t, ((0, 0), (0, B_pad - B)))

    flat_args = [x_t]
    in_specs = [pl.BlockSpec((in_dim, TB), lambda i: (0, i))]
    for li, (w, b) in enumerate(params):
        first = (li == 0)
        last = (li == n_layers - 1)
        if last and out_dim == 1:
            w_arg = w.astype(jnp.float32)          # (H_last, 1): column for VPU reduce
        else:
            w_arg = w.T                            # (out_features, in_features)
            if first and in_dim <= 8:
                w_arg = w_arg.astype(jnp.float32)  # layer-1 VPU path stays f32
            else:
                w_arg = w_arg.astype(jnp.bfloat16) # MXU layers: bf16 stationary weights
        b_arg = b.reshape(-1, 1).astype(jnp.float32)   # (out_features, 1): lane-broadcast
        flat_args += [w_arg, b_arg]
        # Constant index maps -> weights/biases fetched once, resident in VMEM (~30 KB).
        in_specs += [pl.BlockSpec(w_arg.shape, lambda i: (0, 0)),
                     pl.BlockSpec(b_arg.shape, lambda i: (0, 0))]

    grid = (B_pad // TB,)
    flops = 2 * B_pad * sum(int(w.shape[0]) * int(w.shape[1]) for w, _ in params)
    bytes_accessed = (sum(int(a.size) * a.dtype.itemsize for a in flat_args)
                      + out_dim * B_pad * 4)

    out_t = pl.pallas_call(
        mlp_kernel,
        out_shape=jax.ShapeDtypeStruct((out_dim, B_pad), jnp.float32),
        grid=grid,
        in_specs=in_specs,
        out_specs=pl.BlockSpec((out_dim, TB), lambda i: (0, i)),
        compiler_params=pltpu.CompilerParams(
            dimension_semantics=("parallel",)),    # v7x: shard batch tiles over both TCs
        cost_estimate=pl.CostEstimate(
            flops=flops, transcendentals=0, bytes_accessed=bytes_accessed),
    )(*flat_args)

    return out_t[:, :B].T                          # (B, out_dim)


def init_point_model_params(key, input_dim=2, hidden_features=32, out_dim=1):
    """Deterministic init mimicking PyTorch nn.Linear default (U[-1/sqrt(fan_in), ...]).

    Weights stored as (in_features, out_features); biases as (1, out_features).
    """
    dims = [input_dim,
            hidden_features * 4,
            hidden_features * 2,
            hidden_features,
            hidden_features // 2,
            out_dim]
    params = []
    for i in range(len(dims) - 1):
        fan_in, fan_out = dims[i], dims[i + 1]
        key, wk, bk = jax.random.split(key, 3)
        bound = 1.0 / jnp.sqrt(jnp.float32(fan_in))
        w = jax.random.uniform(wk, (fan_in, fan_out), jnp.float32, -bound, bound)
        b = jax.random.uniform(bk, (1, fan_out), jnp.float32, -bound, bound)
        params.append((w, b))
    return params


def point_model_reference(x, params):
    """Pure-JAX f32 reference for correctness checking."""
    h = x
    for i, (w, b) in enumerate(params):
        h = h @ w + b
        if i < len(params) - 1:
            h = jnp.maximum(h, 0.0)
    return h


if __name__ == "__main__":
    key = jax.random.PRNGKey(0)
    key, xk1, xk2, xk3 = jax.random.split(key, 4)

    params = init_point_model_params(key, input_dim=2, hidden_features=32, out_dim=1)

    # bf16 MXU inputs -> slightly looser tolerance vs. the f32 reference.
    ATOL = RTOL = 2e-2

    # Small batch (single padded tile).
    B1 = 8
    x1 = jax.random.normal(xk1, (B1, 2), jnp.float32)
    out1 = jax.block_until_ready(point_model_forward(x1, params))
    ref1 = point_model_reference(x1, params)
    assert out1.shape == (B1, 1), out1.shape
    assert jnp.allclose(out1, ref1, atol=ATOL, rtol=RTOL)

    # Ragged multi-tile batch (pad path, resident weights, grid > 1).
    B2 = 1000
    x2 = jax.random.normal(xk2, (B2, 2), jnp.float32)
    out2 = jax.block_until_ready(point_model_forward(x2, params, block_b=256))
    ref2 = point_model_reference(x2, params)
    assert out2.shape == (B2, 1), out2.shape
    assert jnp.allclose(out2, ref2, atol=ATOL, rtol=RTOL)

    # Exact-division batch via the feature-major fast path (no wrapper transpose/pad):
    # TB = 1024, grid = 2 -> both v7x TensorCores busy.
    B3 = 2048
    x3 = jax.random.normal(xk3, (B3, 2), jnp.float32)
    out3 = jax.block_until_ready(point_model_forward(x3.T, params, feature_major=True))
    ref3 = point_model_reference(x3, params)
    assert out3.shape == (B3, 1), out3.shape
    assert jnp.allclose(out3, ref3, atol=ATOL, rtol=RTOL)

    print("KERNEL_OK")
</pallas_src>

<mosaic_0001>
module attributes {stable_mosaic.version = 11 : i64} {
  func.func @mlp_kernel(%arg0: i32, %arg1: memref<2x128xf32, #tpu.memory_space<vmem>>, %arg2: memref<128x2xf32, #tpu.memory_space<vmem>>, %arg3: memref<128x1xf32, #tpu.memory_space<vmem>>, %arg4: memref<64x128xbf16, #tpu.memory_space<vmem>>, %arg5: memref<64x1xf32, #tpu.memory_space<vmem>>, %arg6: memref<32x64xbf16, #tpu.memory_space<vmem>>, %arg7: memref<32x1xf32, #tpu.memory_space<vmem>>, %arg8: memref<16x32xbf16, #tpu.memory_space<vmem>>, %arg9: memref<16x1xf32, #tpu.memory_space<vmem>>, %arg10: memref<16x1xf32, #tpu.memory_space<vmem>>, %arg11: memref<1x1xf32, #tpu.memory_space<vmem>>, %arg12: memref<1x128xf32, #tpu.memory_space<vmem>>) attributes {dimension_semantics = [#tpu.dimension_semantics<parallel>], iteration_bounds = array<i64: 1>, scalar_prefetch = 0 : i64, scratch_operands = 0 : i64, tpu.core_type = #tpu.core_type<tc>, window_params = [{transform_indices = @transform_0, window_bounds = array<i64: 2, 128>}, {pipeline_mode = #tpu.pipeline_mode<synchronous>, transform_indices = @transform_1, window_bounds = array<i64: 128, 2>}, {pipeline_mode = #tpu.pipeline_mode<synchronous>, transform_indices = @transform_2, window_bounds = array<i64: 128, 1>}, {pipeline_mode = #tpu.pipeline_mode<synchronous>, transform_indices = @transform_3, window_bounds = array<i64: 64, 128>}, {pipeline_mode = #tpu.pipeline_mode<synchronous>, transform_indices = @transform_4, window_bounds = array<i64: 64, 1>}, {pipeline_mode = #tpu.pipeline_mode<synchronous>, transform_indices = @transform_5, window_bounds = array<i64: 32, 64>}, {pipeline_mode = #tpu.pipeline_mode<synchronous>, transform_indices = @transform_6, window_bounds = array<i64: 32, 1>}, {pipeline_mode = #tpu.pipeline_mode<synchronous>, transform_indices = @transform_7, window_bounds = array<i64: 16, 32>}, {pipeline_mode = #tpu.pipeline_mode<synchronous>, transform_indices = @transform_8, window_bounds = array<i64: 16, 1>}, {pipeline_mode = #tpu.pipeline_mode<synchronous>, transform_indices = @transform_9, window_bounds = array<i64: 16, 1>}, {pipeline_mode = #tpu.pipeline_mode<synchronous>, transform_indices = @transform_10, window_bounds = array<i64: 1, 1>}, {transform_indices = @transform_11, window_bounds = array<i64: 1, 128>}]} {
    %c0 = arith.constant 0 : index
    %c0_0 = arith.constant 0 : index
    %0 = vector.load %arg1[%c0, %c0_0] : memref<2x128xf32, #tpu.memory_space<vmem>>, vector<2x128xf32>
    %c0_1 = arith.constant 0 : index
    %c0_2 = arith.constant 0 : index
    %1 = vector.load %arg2[%c0_1, %c0_2] : memref<128x2xf32, #tpu.memory_space<vmem>>, vector<128x2xf32>
    %c0_3 = arith.constant 0 : index
    %c0_4 = arith.constant 0 : index
    %2 = vector.load %arg3[%c0_3, %c0_4] : memref<128x1xf32, #tpu.memory_space<vmem>>, vector<128x1xf32>
    %3 = vector.extract_strided_slice %1 {offsets = [0, 0], sizes = [128, 1], strides = [1, 1]} : vector<128x2xf32> to vector<128x1xf32>
    %4 = vector.extract_strided_slice %0 {offsets = [0, 0], sizes = [1, 128], strides = [1, 1]} : vector<2x128xf32> to vector<1x128xf32>
    %5 = vector.broadcast %3 : vector<128x1xf32> to vector<128x128xf32>
    %6 = vector.broadcast %4 : vector<1x128xf32> to vector<128x128xf32>
    %7 = arith.mulf %5, %6 : vector<128x128xf32>
    %8 = vector.broadcast %2 : vector<128x1xf32> to vector<128x128xf32>
    %9 = arith.addf %8, %7 : vector<128x128xf32>
    %10 = vector.extract_strided_slice %1 {offsets = [0, 1], sizes = [128, 1], strides = [1, 1]} : vector<128x2xf32> to vector<128x1xf32>
    %11 = vector.extract_strided_slice %0 {offsets = [1, 0], sizes = [1, 128], strides = [1, 1]} : vector<2x128xf32> to vector<1x128xf32>
    %12 = vector.broadcast %10 : vector<128x1xf32> to vector<128x128xf32>
    %13 = vector.broadcast %11 : vector<1x128xf32> to vector<128x128xf32>
    %14 = arith.mulf %12, %13 : vector<128x128xf32>
    %15 = arith.addf %9, %14 : vector<128x128xf32>
    %cst = arith.constant 0.000000e+00 : f32
    %16 = vector.broadcast %cst : f32 to vector<128x128xf32>
    %17 = arith.maximumf %15, %16 : vector<128x128xf32>
    %c0_5 = arith.constant 0 : index
    %c0_6 = arith.constant 0 : index
    %18 = vector.load %arg4[%c0_5, %c0_6] : memref<64x128xbf16, #tpu.memory_space<vmem>>, vector<64x128xbf16>
    %19 = arith.truncf %17 : vector<128x128xf32> to vector<128x128xbf16>
    %cst_7 = arith.constant dense<0.000000e+00> : vector<64x128xf32>
    %20 = tpu.matmul %18, %19, %cst_7 {dimension_numbers = #tpu.dot_dimension_numbers<[1], [0], [0], [1], [0, 0, 1, 1], [], []>} : vector<64x128xbf16>, vector<128x128xbf16>, vector<64x128xf32> -> vector<64x128xf32>
    %c0_8 = arith.constant 0 : index
    %c0_9 = arith.constant 0 : index
    %21 = vector.load %arg5[%c0_8, %c0_9] : memref<64x1xf32, #tpu.memory_space<vmem>>, vector<64x1xf32>
    %22 = vector.broadcast %21 : vector<64x1xf32> to vector<64x128xf32>
    %23 = arith.addf %20, %22 : vector<64x128xf32>
    %cst_10 = arith.constant 0.000000e+00 : f32
    %24 = vector.broadcast %cst_10 : f32 to vector<64x128xf32>
    %25 = arith.maximumf %23, %24 : vector<64x128xf32>
    %c0_11 = arith.constant 0 : index
    %c0_12 = arith.constant 0 : index
    %26 = vector.load %arg6[%c0_11, %c0_12] : memref<32x64xbf16, #tpu.memory_space<vmem>>, vector<32x64xbf16>
    %27 = arith.truncf %25 : vector<64x128xf32> to vector<64x128xbf16>
    %cst_13 = arith.constant dense<0.000000e+00> : vector<32x128xf32>
    %28 = tpu.matmul %26, %27, %cst_13 {dimension_numbers = #tpu.dot_dimension_numbers<[1], [0], [0], [1], [0, 0, 1, 1], [], []>} : vector<32x64xbf16>, vector<64x128xbf16>, vector<32x128xf32> -> vector<32x128xf32>
    %c0_14 = arith.constant 0 : index
    %c0_15 = arith.constant 0 : index
    %29 = vector.load %arg7[%c0_14, %c0_15] : memref<32x1xf32, #tpu.memory_space<vmem>>, vector<32x1xf32>
    %30 = vector.broadcast %29 : vector<32x1xf32> to vector<32x128xf32>
    %31 = arith.addf %28, %30 : vector<32x128xf32>
    %cst_16 = arith.constant 0.000000e+00 : f32
    %32 = vector.broadcast %cst_16 : f32 to vector<32x128xf32>
    %33 = arith.maximumf %31, %32 : vector<32x128xf32>
    %c0_17 = arith.constant 0 : index
    %c0_18 = arith.constant 0 : index
    %34 = vector.load %arg8[%c0_17, %c0_18] : memref<16x32xbf16, #tpu.memory_space<vmem>>, vector<16x32xbf16>
    %35 = arith.truncf %33 : vector<32x128xf32> to vector<32x128xbf16>
    %cst_19 = arith.constant dense<0.000000e+00> : vector<16x128xf32>
    %36 = tpu.matmul %34, %35, %cst_19 {dimension_numbers = #tpu.dot_dimension_numbers<[1], [0], [0], [1], [0, 0, 1, 1], [], []>} : vector<16x32xbf16>, vector<32x128xbf16>, vector<16x128xf32> -> vector<16x128xf32>
    %c0_20 = arith.constant 0 : index
    %c0_21 = arith.constant 0 : index
    %37 = vector.load %arg9[%c0_20, %c0_21] : memref<16x1xf32, #tpu.memory_space<vmem>>, vector<16x1xf32>
    %38 = vector.broadcast %37 : vector<16x1xf32> to vector<16x128xf32>
    %39 = arith.addf %36, %38 : vector<16x128xf32>
    %cst_22 = arith.constant 0.000000e+00 : f32
    %40 = vector.broadcast %cst_22 : f32 to vector<16x128xf32>
    %41 = arith.maximumf %39, %40 : vector<16x128xf32>
    %c0_23 = arith.constant 0 : index
    %c0_24 = arith.constant 0 : index
    %42 = vector.load %arg10[%c0_23, %c0_24] : memref<16x1xf32, #tpu.memory_space<vmem>>, vector<16x1xf32>
    %43 = vector.broadcast %42 : vector<16x1xf32> to vector<16x128xf32>
    %44 = arith.mulf %41, %43 : vector<16x128xf32>
    %cst_25 = arith.constant dense<0.000000e+00> : vector<128xf32>
    %45 = vector.multi_reduction <add>, %44, %cst_25 [0] : vector<16x128xf32> to vector<128xf32>
    %46 = vector.shape_cast %45 : vector<128xf32> to vector<1x128xf32>
    %c0_26 = arith.constant 0 : index
    %c0_27 = arith.constant 0 : index
    %47 = vector.load %arg11[%c0_26, %c0_27] : memref<1x1xf32, #tpu.memory_space<vmem>>, vector<1x1xf32>
    %48 = vector.broadcast %47 : vector<1x1xf32> to vector<1x128xf32>
    %49 = arith.addf %46, %48 : vector<1x128xf32>
    %c0_28 = arith.constant 0 : index
    %c0_29 = arith.constant 0 : index
    %50 = vector.load %arg12[%c0_28, %c0_29] : memref<1x128xf32, #tpu.memory_space<vmem>>, vector<1x128xf32>
    tpu.vector_store %arg12[%c0_28, %c0_29], %49 {strides = array<i32>} : memref<1x128xf32, #tpu.memory_space<vmem>>, vector<1x128xf32>,
    return
  }
  func.func @transform_0(%arg0: i32) -> (i32, i32) {
    %c0_i32 = arith.constant 0 : i32
    %c0_i32_0 = arith.constant 0 : i32
    return %c0_i32, %arg0 : i32, i32
  }
  func.func @transform_1(%arg0: i32) -> (i32, i32) {
    %c0_i32 = arith.constant 0 : i32
    %c0_i32_0 = arith.constant 0 : i32
    %c0_i32_1 = arith.constant 0 : i32
    return %c0_i32, %c0_i32_0 : i32, i32
  }
  func.func @transform_2(%arg0: i32) -> (i32, i32) {
    %c0_i32 = arith.constant 0 : i32
    %c0_i32_0 = arith.constant 0 : i32
    %c0_i32_1 = arith.constant 0 : i32
    return %c0_i32, %c0_i32_0 : i32, i32
  }
  func.func @transform_3(%arg0: i32) -> (i32, i32) {
    %c0_i32 = arith.constant 0 : i32
    %c0_i32_0 = arith.constant 0 : i32
    %c0_i32_1 = arith.constant 0 : i32
    return %c0_i32, %c0_i32_0 : i32, i32
  }
  func.func @transform_4(%arg0: i32) -> (i32, i32) {
    %c0_i32 = arith.constant 0 : i32
    %c0_i32_0 = arith.constant 0 : i32
    %c0_i32_1 = arith.constant 0 : i32
    return %c0_i32, %c0_i32_0 : i32, i32
  }
  func.func @transform_5(%arg0: i32) -> (i32, i32) {
    %c0_i32 = arith.constant 0 : i32
    %c0_i32_0 = arith.constant 0 : i32
    %c0_i32_1 = arith.constant 0 : i32
    return %c0_i32, %c0_i32_0 : i32, i32
  }
  func.func @transform_6(%arg0: i32) -> (i32, i32) {
    %c0_i32 = arith.constant 0 : i32
    %c0_i32_0 = arith.constant 0 : i32
    %c0_i32_1 = arith.constant 0 : i32
    return %c0_i32, %c0_i32_0 : i32, i32
  }
  func.func @transform_7(%arg0: i32) -> (i32, i32) {
    %c0_i32 = arith.constant 0 : i32
    %c0_i32_0 = arith.constant 0 : i32
    %c0_i32_1 = arith.constant 0 : i32
    return %c0_i32, %c0_i32_0 : i32, i32
  }
  func.func @transform_8(%arg0: i32) -> (i32, i32) {
    %c0_i32 = arith.constant 0 : i32
    %c0_i32_0 = arith.constant 0 : i32
    %c0_i32_1 = arith.constant 0 : i32
    return %c0_i32, %c0_i32_0 : i32, i32
  }
  func.func @transform_9(%arg0: i32) -> (i32, i32) {
    %c0_i32 = arith.constant 0 : i32
    %c0_i32_0 = arith.constant 0 : i32
    %c0_i32_1 = arith.constant 0 : i32
    return %c0_i32, %c0_i32_0 : i32, i32
  }
  func.func @transform_10(%arg0: i32) -> (i32, i32) {
    %c0_i32 = arith.constant 0 : i32
    %c0_i32_0 = arith.constant 0 : i32
    %c0_i32_1 = arith.constant 0 : i32
    return %c0_i32, %c0_i32_0 : i32, i32
  }
  func.func @transform_11(%arg0: i32) -> (i32, i32) {
    %c0_i32 = arith.constant 0 : i32
    %c0_i32_0 = arith.constant 0 : i32
    return %c0_i32, %arg0 : i32, i32
  }
}

</mosaic_0001>

<bundles_post_ra>
// kernel: tpu_custom_call.1
= control target key start
LH: loop header
LB: loop body
LE: loop exit
PB: predicated region body
PF: predicated region fallthrough
CT: control target
= control target key end

     0   :  { %s1077_s0 = inlined_call_operand.vmem [shape: f32[2,128], index: 0, kind: input, shape index: {}]   ;;  %s1078_s1 = inlined_call_operand.vmem [shape: f32[128,2], index: 1, kind: input, shape index: {}]   ;;  %s1079_s2 = inlined_call_operand.vmem [shape: f32[128,1], index: 2, kind: input, shape index: {}]   ;;  %s1080_s3 = inlined_call_operand.vmem [shape: bf16[64,128], index: 3, kind: input, shape index: {}]   ;;  %s1081_s4 = inlined_call_operand.vmem [shape: f32[64,1], index: 4, kind: input, shape index: {}]   ;;  %s1082_s5 = inlined_call_operand.vmem [shape: bf16[32,64], index: 5, kind: input, shape index: {}]   ;;  %s1083_s6 = inlined_call_operand.vmem [shape: f32[32,1], index: 6, kind: input, shape index: {}]   ;;  %s1084_s7 = inlined_call_operand.vmem [shape: bf16[16,32], index: 7, kind: input, shape index: {}]   ;;  %s1085_s8 = inlined_call_operand.vmem [shape: f32[16,1], index: 8, kind: input, shape index: {}]   ;;  %s1086_s9 = inlined_call_operand.vmem [shape: f32[16,1], index: 9, kind: input, shape index: {}]   ;;  %s1087_s10 = inlined_call_operand.<no memory space> [shape: f32[1,1], index: 10, kind: input, shape index: {}]   ;;  %s1088_s11 = inlined_call_operand.hbm [shape: f32[1,128], index: 11, kind: output, shape index: {}]  }
   0x1   :  { %v16_v0 = vstv %s1087_s10 }
   0x2   :  { %17 = vst [vmem:[#allocation2] sm:$0x1] %v16_v0 }
   0x3   :  { %v73_v1 = vld [vmem:[%s1079_s2 + $0x70] sm:$0xff]  ;;  %v772_v3 = vmov 0   ;;  %v773_v4 = vmov 1  }
   0x4   :  { %v57_v2 = vld [vmem:[%s1078_s1 + $0x70] sm:$0xff]  ;;  %715 = vset.pattern.permute.xlu1 %v772_v3  ;;  %714 = vset.pattern.permute.xlu0 %v772_v3 }
   0x5   :  { %244 = vperm.xlu1 %715, %v73_v1   ;;  %147 = vperm.xlu0 %714, %v57_v2  }
   0x6   :  { %716 = vset.pattern.permute.xlu2 %v773_v4 }
   0x7   :  { %18 = vsyncpa [#allocation4], 0  ;;  %325 = vperm.xlu2 %716, %v57_v2   ;;  %v74_v5 = vld [vmem:[%s1079_s2 + $0x78] sm:$0xff]  ;;  %v56_v7 = vld [vmem:[%s1078_s1 + $0x68] sm:$0xff]  ;;  %vm548_vm0 = vcmask 523264   ;;  %vm599_vm1 = vcmask 261120  }
   0x8   :  { %v58_v6 = vld [vmem:[%s1078_s1 + $0x78] sm:$0xff]  ;;  %v55_v8 = vld [vmem:[%s1078_s1 + $0x60] sm:$0xff]  ;;  %v72_v10 = vld [vmem:[%s1079_s2 + $0x68] sm:$0xff]  ;;  %s656_s21 = sshll.u32 %s1088_s11, 4  ;;  %s657_s21 = int_to_ptr.hbm [resolvable:$true] %s656_s21 }
   0x9   :  { %v71_v9 = vld [vmem:[%s1079_s2 + $0x60] sm:$0xff]  ;;  %v53_v11 = vld [vmem:[%s1078_s1 + $0x50] sm:$0xff]  ;;  %v54_v12 = vld [vmem:[%s1078_s1 + $0x58] sm:$0xff] }
   0xa   :  { %v69_v13 = vld [vmem:[%s1079_s2 + $0x50] sm:$0xff]  ;;  %v70_v14 = vld [vmem:[%s1079_s2 + $0x58] sm:$0xff]  ;;  %v51_v15 = vld [vmem:[%s1078_s1 + $0x40] sm:$0xff] }
   0xb   :  { %v52_v16 = vld [vmem:[%s1078_s1 + $0x48] sm:$0xff]  ;;  %v67_v17 = vld [vmem:[%s1079_s2 + $0x40] sm:$0xff]  ;;  %v49_v19 = vld [vmem:[%s1078_s1 + $0x30] sm:$0xff] }
   0xc   :  { %v68_v18 = vld [vmem:[%s1079_s2 + $0x48] sm:$0xff]  ;;  %v50_v20 = vld [vmem:[%s1078_s1 + $0x38] sm:$0xff]  ;;  %v65_v22 = vld [vmem:[%s1079_s2 + $0x30] sm:$0xff] }
   0xd   :  { %249 = vperm.xlu1 %715, %v74_v5   ;;  %152 = vperm.xlu0 %714, %v58_v6   ;;  %v66_v21 = vld [vmem:[%s1079_s2 + $0x38] sm:$0xff]  ;;  %v47_v23 = vld [vmem:[%s1078_s1 + $0x20] sm:$0xff]  ;;  %v48_v24 = vld [vmem:[%s1078_s1 + $0x28] sm:$0xff] }
   0xe   :  { %v64_v25 = vld [vmem:[%s1079_s2 + $0x28] sm:$0xff]  ;;  %v63_v26 = vld [vmem:[%s1079_s2 + $0x20] sm:$0xff]  ;;  %v45_v27 = vld [vmem:[%s1078_s1 + $0x10] sm:$0xff] }
   0xf   :  { %329 = vperm.xlu2 %716, %v58_v6   ;;  %v62_v29 = vld [vmem:[%s1079_s2 + $0x18] sm:$0xff]  ;;  %v61_v31 = vld [vmem:[%s1079_s2 + $0x10] sm:$0xff]  ;;  %v43_v33 = vld [vmem:[%s1078_s1] sm:$0xff] }
  0x10   :  { %v46_v30 = vld [vmem:[%s1078_s1 + $0x18] sm:$0xff]  ;;  %v42_v34 = vld [vmem:[%s1077_s0] sm:$0x3]  ;;  %v60_v40 = vld [vmem:[%s1079_s2 + $0x8] sm:$0xff] }
  0x11   :  { %v952_v35 = vperm.slane %v42_v34, 0  ;;  %v960_v41 = vperm.slane %v42_v34, 1  ;;  %v44_v43 = vld [vmem:[%s1078_s1 + $0x8] sm:$0xff]  ;;  %v59_v48 = vld [vmem:[%s1079_s2] sm:$0xff]  ;;  %v403_v51 = vld [vmem:[%s1081_s4 + $0x30] sm:$0xff] }
  0x12   :  { %v402_v60 = vld [vmem:[%s1081_s4 + $0x28] sm:$0xff] }
  0x15   :  { %142 = vperm.xlu1 %715, %v56_v7   ;;  %137 = vperm.xlu0 %714, %v55_v8  }
  0x17   :  { %717 = vset.pattern.permute.xlu2 %v772_v3 }
  0x18   :  { %234 = vperm.xlu2 %717, %v71_v9   ;;  %v397_v9 = vld [vmem:[%s1081_s4] sm:$0xff] }
  0x1d   :  { %718 = vset.pattern.permute.xlu1 %v773_v4  ;;  %239 = vperm.xlu0 %714, %v72_v10  }
  0x1e   :  { %317 = vperm.xlu1 %718, %v55_v8  }
  0x20   :  { %719 = vset.pattern.permute.xlu2 %v773_v4 }
  0x21   :  { %321 = vperm.xlu2 %719, %v56_v7  }
  0x25   :  { %127 = vperm.xlu0 %714, %v53_v11  }
  0x26   :  { %720 = vset.pattern.permute.xlu1 %v772_v3 }
  0x27   :  { %132 = vperm.xlu1 %720, %v54_v12  }
  0x29   :  { %721 = vset.pattern.permute.xlu2 %v772_v3 }
  0x2a   :  { %224 = vperm.xlu2 %721, %v69_v13  }
  0x2d   :  { %229 = vperm.xlu0 %714, %v70_v14  }
  0x2f   :  { %722 = vset.pattern.permute.xlu1 %v773_v4 }
  0x30   :  { %309 = vperm.xlu1 %722, %v53_v11  }
  0x32   :  { %723 = vset.pattern.permute.xlu2 %v773_v4 }
  0x33   :  { %313 = vperm.xlu2 %723, %v54_v12  }
  0x35   :  { %117 = vperm.xlu0 %714, %v51_v15  }
  0x38   :  { %724 = vset.pattern.permute.xlu1 %v772_v3 }
  0x39   :  { %122 = vperm.xlu1 %724, %v52_v16  }
  0x3b   :  { %725 = vset.pattern.permute.xlu2 %v772_v3 }
  0x3c   :  { %214 = vperm.xlu2 %725, %v67_v17  }
  0x3d   :  { %219 = vperm.xlu0 %714, %v68_v18  }
  0x41   :  { %726 = vset.pattern.permute.xlu1 %v773_v4 }
  0x42   :  { %301 = vperm.xlu1 %726, %v51_v15  }
  0x44   :  { %727 = vset.pattern.permute.xlu2 %v773_v4 }
  0x45   :  { %107 = vperm.xlu0 %714, %v49_v19   ;;  %305 = vperm.xlu2 %727, %v52_v16   ;;  %v517_v16 = vld [vmem:[%s1083_s6 + $0x18] sm:$0xff] }
  0x4a   :  { %728 = vset.pattern.permute.xlu1 %v772_v3 }
  0x4b   :  { %112 = vperm.xlu1 %728, %v50_v20  }
  0x4d   :  { %209 = vperm.xlu0 %714, %v66_v21   ;;  %729 = vset.pattern.permute.xlu2 %v772_v3 }
  0x4e   :  { %204 = vperm.xlu2 %729, %v65_v22  }
  0x53   :  { %730 = vset.pattern.permute.xlu1 %v773_v4 }
  0x54   :  { %293 = vperm.xlu1 %730, %v49_v19  }
  0x55   :  { %97 = vperm.xlu0 %714, %v47_v23  }
  0x56   :  { %731 = vset.pattern.permute.xlu2 %v773_v4 }
  0x57   :  { %297 = vperm.xlu2 %731, %v50_v20  }
  0x5c   :  { %732 = vset.pattern.permute.xlu1 %v772_v3 }
  0x5d   :  { %102 = vperm.xlu1 %732, %v48_v24   ;;  %199 = vperm.xlu0 %714, %v64_v25  }
  0x5f   :  { %733 = vset.pattern.permute.xlu2 %v772_v3 }
  0x60   :  { %194 = vperm.xlu2 %733, %v63_v26  }
  0x61   :  { %v326_v28 = vpop.permute.xlu2 %325 }
  0x62   :  { %v347_v46 = vmul.f32 %v960_v41, %v326_v28 }
  0x65   :  { %734 = vset.pattern.permute.xlu1 %v773_v4  ;;  %87 = vperm.xlu0 %714, %v45_v27  }
  0x66   :  { %285 = vperm.xlu1 %734, %v47_v23   ;;  %v582_v23 = vld [vmem:[%s1085_s8] sm:$0xff] }
  0x68   :  { %735 = vset.pattern.permute.xlu2 %v773_v4 }
  0x69   :  { %289 = vperm.xlu2 %735, %v48_v24   ;;  %v330_v32 = vpop.permute.xlu2 %329 }
  0x6a   :  { %v348_v49 = vmul.f32 %v960_v41, %v330_v32  ;;  %v620_v32 = vld [vmem:[%s1086_s9 + $0x8] sm:$0xff] }
  0x6d   :  { %189 = vperm.xlu0 %714, %v62_v29  }
  0x6e   :  { %736 = vset.pattern.permute.xlu1 %v772_v3 }
  0x6f   :  { %92 = vperm.xlu1 %736, %v46_v30  }
  0x71   :  { %737 = vset.pattern.permute.xlu2 %v772_v3 }
  0x72   :  { %184 = vperm.xlu2 %737, %v61_v31   ;;  %v235_v38 = vpop.permute.xlu2 %234 }
  0x75   :  { %77 = vperm.xlu0 %714, %v43_v33  }
  0x77   :  { %v245_v36 = vpop.permute.xlu1 %244  ;;  %v148_v37 = vpop.permute.xlu0 %147  ;;  %738 = vset.pattern.permute.xlu1 %v773_v4 }
  0x78   :  { %277 = vperm.xlu1 %738, %v45_v27   ;;  %v170_v39 = vmul.f32 %v952_v35, %v148_v37 }
  0x7a   :  { %739 = vset.pattern.permute.xlu2 %v773_v4  ;;  %v266_v42 = vadd.f32 %v245_v36, %v170_v39 }
  0x7b   :  { %281 = vperm.xlu2 %739, %v46_v30   ;;  %v322_v53 = vpop.permute.xlu2 %321 }
  0x7c   :  { %v363_v52 = vadd.f32 %v347_v46, %v266_v42  ;;  %v346_v0 = vmul.f32 %v960_v41, %v322_v53 }
  0x7d   :  { %179 = vperm.xlu0 %714, %v60_v40  }
  0x7e   :  { %v379_v55 = vmax.f32 %v363_v52, 0.0 }
  0x7f   :  { %v250_v44 = vpop.permute.xlu1 %249  ;;  %v153_v45 = vpop.permute.xlu0 %152 }
  0x80   :  { %v171_v47 = vmul.f32 %v952_v35, %v153_v45  ;;  %740 = vset.pattern.permute.xlu1 %v772_v3 }
  0x81   :  { %82 = vperm.xlu1 %740, %v44_v43  }
  0x82   :  { %v267_v50 = vadd.f32 %v250_v44, %v171_v47 }
  0x83   :  { %741 = vset.pattern.permute.xlu2 %v772_v3 }
  0x84   :  { %v364_v54 = vadd.f32 %v348_v49, %v267_v50  ;;  %174 = vperm.xlu2 %741, %v59_v48   ;;  %v225_v61 = vpop.permute.xlu2 %224 }
  0x85   :  { %437 = vperm.xlu0 %714, %v403_v51  }
  0x86   :  { %v380_v56 = vmax.f32 %v364_v54, 0.0 }
  0x87   :  { %v143_v57 = vpop.permute.xlu1 %142  ;;  %v138_v58 = vpop.permute.xlu0 %137 }
  0x88   :  { %v396_v59 = vpack.c.bf16 %v380_v56, %v379_v55  ;;  %v168_v62 = vmul.f32 %v952_v35, %v138_v58  ;;  %v169_v63 = vmul.f32 %v952_v35, %v143_v57 }
  0x89   :  { %742 = vset.pattern.permute.xlu1 %v773_v4 }
  0x8a   :  { %269 = vperm.xlu1 %742, %v43_v33   ;;  %469 = vmatpush.bf16.msra.mxu0 %v396_v59  ;;  %v264_v6 = vadd.f32 %v235_v38, %v168_v62 }
  0x8b   :  { %703 = vmatpush.bf16.msra.mxu3 %v396_v59 }
  0x8c   :  { %743 = vset.pattern.permute.xlu2 %v773_v4 }
  0x8d   :  { %432 = vperm.xlu0 %714, %v402_v60   ;;  %273 = vperm.xlu2 %743, %v44_v43   ;;  %v314_v12 = vpop.permute.xlu2 %313 }
  0x8e   :  { %v344_v19 = vmul.f32 %v960_v41, %v314_v12 }
  0x8f   :  { %v240_v1 = vpop.permute.xlu0 %239 }
  0x90   :  { %v265_v2 = vadd.f32 %v240_v1, %v169_v63  ;;  %v318_v5 = vpop.permute.xlu1 %317 }
  0x91   :  { %v345_v7 = vmul.f32 %v960_v41, %v318_v5 }
  0x92   :  { %v362_v8 = vadd.f32 %v346_v0, %v265_v2  ;;  %744 = vset.pattern.permute.xlu1 %v772_v3 }
  0x93   :  { %v361_v4 = vadd.f32 %v345_v7, %v264_v6 }
  0x94   :  { %v378_v10 = vmax.f32 %v362_v8, 0.0 }
  0x95   :  { %v377_v11 = vmax.f32 %v361_v4, 0.0  ;;  %407 = vperm.xlu0 %714, %v397_v9   ;;  %745 = vset.pattern.permute.xlu2 %v772_v3 }
  0x96   :  { %v215_v3 = vpop.permute.xlu2 %214 }
  0x97   :  { %v128_v13 = vpop.permute.xlu0 %127  ;;  %v395_v14 = vpack.c.bf16 %v378_v10, %v377_v11 }
  0x98   :  { %v166_v18 = vmul.f32 %v952_v35, %v128_v13 }
  0x99   :  { %v133_v15 = vpop.permute.xlu1 %132  ;;  %470 = vmatpush.bf16.msra.mxu0 %v395_v14  ;;  %704 = vmatpush.bf16.msra.mxu3 %v395_v14 }
  0x9a   :  { %v167_v17 = vmul.f32 %v952_v35, %v133_v15  ;;  %v262_v24 = vadd.f32 %v225_v61, %v166_v18 }
  0x9d   :  { %535 = vperm.xlu0 %714, %v517_v16  }
  0x9f   :  { %v230_v20 = vpop.permute.xlu0 %229  ;;  %v306_v33 = vpop.permute.xlu2 %305 }
  0xa0   :  { %v263_v21 = vadd.f32 %v230_v20, %v167_v17  ;;  %v342_v39 = vmul.f32 %v960_v41, %v306_v33 }
  0xa2   :  { %v310_v22 = vpop.permute.xlu1 %309  ;;  %v360_v25 = vadd.f32 %v344_v19, %v263_v21 }
  0xa3   :  { %v343_v26 = vmul.f32 %v960_v41, %v310_v22 }
  0xa4   :  { %v376_v28 = vmax.f32 %v360_v25, 0.0 }
  0xa5   :  { %v359_v27 = vadd.f32 %v343_v26, %v262_v24  ;;  %586 = vperm.xlu0 %714, %v582_v23   ;;  %v404_v23 = vld [vmem:[%s1081_s4 + $0x38] sm:$0xff] }
  0xa6   :  { %442 = vperm.xlu1 %744, %v404_v23  }
  0xa7   :  { %v375_v29 = vmax.f32 %v359_v27, 0.0  ;;  %v118_v30 = vpop.permute.xlu0 %117 }
  0xa8   :  { %v164_v38 = vmul.f32 %v952_v35, %v118_v30  ;;  %v205_v43 = vpop.permute.xlu2 %204  ;;  %v399_v30 = vld [vmem:[%s1081_s4 + $0x10] sm:$0xff] }
  0xa9   :  { %v394_v31 = vpack.c.bf16 %v376_v28, %v375_v29 }
  0xaa   :  { %v260_v44 = vadd.f32 %v215_v3, %v164_v38 }
  0xab   :  { %v123_v34 = vpop.permute.xlu1 %122  ;;  %471 = vmatpush.bf16.msra.mxu0 %v394_v31  ;;  %705 = vmatpush.bf16.msra.mxu3 %v394_v31 }
  0xac   :  { %v165_v36 = vmul.f32 %v952_v35, %v123_v34 }
  0xad   :  { %628 = vperm.xlu0 %714, %v620_v32  }
  0xae   :  { %417 = vperm.xlu1 %744, %v399_v30  }
  0xaf   :  { %v220_v37 = vpop.permute.xlu0 %219 }
  0xb0   :  { %v261_v40 = vadd.f32 %v220_v37, %v165_v36 }
  0xb1   :  { %v298_v53 = vpop.permute.xlu2 %297 }
  0xb2   :  { %v358_v45 = vadd.f32 %v342_v39, %v261_v40  ;;  %v340_v57 = vmul.f32 %v960_v41, %v298_v53 }
  0xb4   :  { %v302_v42 = vpop.permute.xlu1 %301  ;;  %v374_v49 = vmax.f32 %v358_v45, 0.0 }
  0xb5   :  { %v341_v46 = vmul.f32 %v960_v41, %v302_v42  ;;  %v398_v42 = vld [vmem:[%s1081_s4 + $0x8] sm:$0xff] }
  0xb6   :  { %412 = vperm.xlu1 %744, %v398_v42  }
  0xb7   :  { %v357_v47 = vadd.f32 %v341_v46, %v260_v44  ;;  %v108_v48 = vpop.permute.xlu0 %107 }
  0xb8   :  { %v162_v56 = vmul.f32 %v952_v35, %v108_v48  ;;  %v514_v48 = vld [vmem:[%s1083_s6] sm:$0xff] }
  0xb9   :  { %v373_v50 = vmax.f32 %v357_v47, 0.0 }
  0xba   :  { %v195_v60 = vpop.permute.xlu2 %194  ;;  %v258_v61 = vadd.f32 %v205_v43, %v162_v56 }
  0xbb   :  { %v393_v51 = vpack.c.bf16 %v374_v49, %v373_v50 }
  0xbd   :  { %v113_v52 = vpop.permute.xlu1 %112  ;;  %472 = vmatpush.bf16.msra.mxu0 %v393_v51  ;;  %706 = vmatpush.bf16.msra.mxu3 %v393_v51 }
  0xbe   :  { %v163_v54 = vmul.f32 %v952_v35, %v113_v52  ;;  %520 = vperm.xlu1 %744, %v514_v48  }
  0xbf   :  { %v210_v55 = vpop.permute.xlu0 %209 }
  0xc0   :  { %v259_v58 = vadd.f32 %v210_v55, %v163_v54 }
  0xc2   :  { %v356_v62 = vadd.f32 %v340_v57, %v259_v58  ;;  %v583_v57 = vld [vmem:[%s1085_s8 + $0x8] sm:$0xff]  ;;  %v401_v58 = vld [vmem:[%s1081_s4 + $0x20] sm:$0xff] }
  0xc3   :  { %v290_v9 = vpop.permute.xlu2 %289  ;;  %427 = vperm.xlu2 %745, %v401_v58  }
  0xc4   :  { %v372_v2 = vmax.f32 %v356_v62, 0.0  ;;  %v338_v12 = vmul.f32 %v960_v41, %v290_v9  ;;  %v400_v62 = vld [vmem:[%s1081_s4 + $0x18] sm:$0xff] }
  0xc6   :  { %v294_v59 = vpop.permute.xlu1 %293  ;;  %591 = vperm.xlu1 %744, %v583_v57  }
  0xc7   :  { %v339_v63 = vmul.f32 %v960_v41, %v294_v59  ;;  %v98_v0 = vpop.permute.xlu0 %97 }
  0xc8   :  { %v160_v10 = vmul.f32 %v952_v35, %v98_v0  ;;  %v516_v0 = vld [vmem:[%s1083_s6 + $0x10] sm:$0xff] }
  0xc9   :  { %v355_v1 = vadd.f32 %v339_v63, %v258_v61  ;;  %v696_v61 = vld [vmem:[%s1080_s3] sm:$0xff] }
  0xca   :  { %v256_v14 = vadd.f32 %v195_v60, %v160_v10  ;;  %v640_v63 = vld [vmem:[#allocation2] sm:$0x1] }
  0xcb   :  { %v371_v5 = vmax.f32 %v355_v1, 0.0  ;;  %422 = vperm.xlu2 %745, %v400_v62   ;;  %v699_v1 = vld [vmem:[%s1080_s3 + $0x18] sm:$0xff] }
  0xcc   :  { %v185_v18 = vpop.permute.xlu2 %184 }
  0xcd   :  { %v392_v6 = vpack.c.bf16 %v372_v2, %v371_v5  ;;  %v697_v2 = vld [vmem:[%s1080_s3 + $0x8] sm:$0xff] }
  0xce   :  { %643 = vperm.xlu1 %744, %v640_v63   ;;  %v515_v5 = vld [vmem:[%s1083_s6 + $0x8] sm:$0xff] }
  0xcf   :  { %v103_v7 = vpop.permute.xlu1 %102  ;;  %473 = vmatpush.bf16.msra.mxu0 %v392_v6  ;;  %707 = vmatpush.bf16.msra.mxu3 %v392_v6  ;;  %v200_v8 = vpop.permute.xlu0 %199  ;;  %v619_v6 = vld [vmem:[%s1086_s9] sm:$0xff] }
  0xd0   :  { %v161_v4 = vmul.f32 %v952_v35, %v103_v7 }
  0xd2   :  { %v257_v11 = vadd.f32 %v200_v8, %v161_v4 }
  0xd3   :  { %530 = vperm.xlu2 %745, %v516_v0  }
  0xd4   :  { %v354_v15 = vadd.f32 %v338_v12, %v257_v11 }
  0xd5   :  { %v282_v26 = vpop.permute.xlu2 %281 }
  0xd6   :  { %v370_v20 = vmax.f32 %v354_v15, 0.0  ;;  %v336_v28 = vmul.f32 %v960_v41, %v282_v26 }
  0xd7   :  { %v88_v17 = vpop.permute.xlu0 %87 }
  0xd8   :  { %v286_v13 = vpop.permute.xlu1 %285  ;;  %v158_v27 = vmul.f32 %v952_v35, %v88_v17 }
  0xd9   :  { %v337_v16 = vmul.f32 %v960_v41, %v286_v13 }
  0xda   :  { %v254_v32 = vadd.f32 %v185_v18, %v158_v27 }
  0xdb   :  { %v353_v19 = vadd.f32 %v337_v16, %v256_v14  ;;  %525 = vperm.xlu2 %745, %v515_v5  }
  0xdd   :  { %v369_v21 = vmax.f32 %v353_v19, 0.0 }
  0xde   :  { %v175_v38 = vpop.permute.xlu2 %174 }
  0xdf   :  { %v391_v3 = vpack.c.bf16 %v370_v20, %v369_v21  ;;  %v190_v25 = vpop.permute.xlu0 %189 }
  0xe1   :  { %v93_v22 = vpop.permute.xlu1 %92  ;;  %474 = vmatpush.bf16.msra.mxu0 %v391_v3  ;;  %708 = vmatpush.bf16.msra.mxu3 %v391_v3 }
  0xe2   :  { %v159_v24 = vmul.f32 %v952_v35, %v93_v22 }
  0xe3   :  { %623 = vperm.xlu2 %745, %v619_v6  }
  0xe4   :  { %v255_v29 = vadd.f32 %v190_v25, %v159_v24 }
  0xe6   :  { %v352_v34 = vadd.f32 %v336_v28, %v255_v29 }
  0xe7   :  { %v78_v37 = vpop.permute.xlu0 %77  ;;  %v274_v46 = vpop.permute.xlu2 %273 }
  0xe8   :  { %v368_v40 = vmax.f32 %v352_v34, 0.0  ;;  %v156_v49 = vmul.f32 %v952_v35, %v78_v37  ;;  %v334_v51 = vmul.f32 %v960_v41, %v274_v46 }
  0xea   :  { %v278_v31 = vpop.permute.xlu1 %277  ;;  %v252_v53 = vadd.f32 %v175_v38, %v156_v49 }
  0xeb   :  { %v335_v33 = vmul.f32 %v960_v41, %v278_v31 }
  0xed   :  { %v351_v36 = vadd.f32 %v335_v33, %v254_v32 }
  0xef   :  { %v367_v39 = vmax.f32 %v351_v36, 0.0  ;;  %v180_v47 = vpop.permute.xlu0 %179 }
  0xf1   :  { %v390_v43 = vpack.c.bf16 %v368_v40, %v367_v39 }
  0xf3   :  { %v83_v44 = vpop.permute.xlu1 %82  ;;  %475 = vmatpush.bf16.msra.mxu0 %v390_v43  ;;  %709 = vmatpush.bf16.msra.mxu3 %v390_v43  ;;  %v700_v43 = vld [vmem:[%s1082_s5] sm:$0xff] }
  0xf4   :  { %v157_v45 = vmul.f32 %v952_v35, %v83_v44  ;;  %v701_v44 = vld [vmem:[%s1082_s5 + $0x8] sm:$0xff] }
  0xf6   :  { %v253_v50 = vadd.f32 %v180_v47, %v157_v45 }
  0xf7   :  { %v438_v11 = vpop.permute.xlu0 %437 }
  0xf8   :  { %v350_v54 = vadd.f32 %v334_v51, %v253_v50 }
  0xfa   :  { %v366_v35 = vmax.f32 %v350_v54, 0.0 }
  0xfc   :  { %v270_v52 = vpop.permute.xlu1 %269 }
  0xfd   :  { %v333_v55 = vmul.f32 %v960_v41, %v270_v52  ;;  %v698_v41 = vld [vmem:[%s1080_s3 + $0x10] sm:$0xff] }
  0xff   :  { %v349_v56 = vadd.f32 %v333_v55, %v252_v53  ;;  %v433_v17 = vpop.permute.xlu0 %432 }
 0x101   :  { %v365_v59 = vmax.f32 %v349_v56, 0.0 }
 0x103   :  { %v389_v60 = vpack.c.bf16 %v366_v35, %v365_v59 }
 0x105   :  { %476 = vmatpush.bf16.msra.mxu0 %v389_v60  ;;  %710 = vmatpush.bf16.msra.mxu3 %v389_v60 }
 0x107   :  { %v408_v36 = vpop.permute.xlu0 %407 }
 0x108   :  { %477 = vmatmul.bf16.vlgmr.msra.gmra.mxu0 %v696_v61  ;;  %487 = vmatmul.bf16.vlgmr.msra.gmra.mxu3 %v698_v41  ;;  %v702_v41 = vld [vmem:[%s1084_s7] sm:$0xff]  ;;  %s774_s7 = smov [#allocation3]  }
 0x109   :  { %s654_s19 = sshll.u32 %s774_s7, 4  ;;  %s655_s19 = int_to_ptr.vmem [resolvable:$true] %s654_s19 }
 0x10f   :  { %v536_v49 = vpop.permute.xlu0 %535 }
 0x117   :  { %v587_v63 = vpop.permute.xlu0 %586 }
 0x118   :  { %492 = vmatmul.bf16.gmra.mxu3 %v699_v1  ;;  %482 = vmatmul.bf16.gmra.mxu0 %v697_v2  ;;  %v443_v10 = vpop.permute.xlu1 %442 }
 0x11d   :  { %v428_v14 = vpop.permute.xlu2 %427 }
 0x120   :  { %v418_v15 = vpop.permute.xlu1 %417 }
 0x125   :  { %v423_v24 = vpop.permute.xlu2 %422 }
 0x128   :  { %v413_v30 = vpop.permute.xlu1 %412 }
 0x12d   :  { %v531_v47 = vpop.permute.xlu2 %530 }
 0x130   :  { %v521_v55 = vpop.permute.xlu1 %520 }
 0x135   :  { %v526_v51 = vpop.permute.xlu2 %525 }
 0x138   :  { %v592_v1 = vpop.permute.xlu1 %591 }
 0x185   :  { %v478_v7 = vpop.f32.mrf.mxu0 }
 0x186   :  { %v479_v37 = vadd.f32 %v478_v7, %v408_v36 }
 0x188   :  { %v498_v40 = vmax.f32 %v479_v37, 0.0 }
 0x18b   :  { %v488_v8 = vpop.f32.mrf.mxu3 }
 0x18c   :  { %v489_v3 = vadd.f32 %v488_v8, %v428_v14  ;;  %v629_v8 = vpop.permute.xlu0 %628 }
 0x18d   :  { %v480_v9 = vpop.f32.mrf.mxu0 }
 0x18e   :  { %v502_v29 = vmax.f32 %v489_v3, 0.0  ;;  %v481_v31 = vadd.f32 %v480_v9, %v413_v30  ;;  %v624_v9 = vpop.permute.xlu2 %623 }
 0x190   :  { %v499_v38 = vmax.f32 %v481_v31, 0.0 }
 0x192   :  { %v510_v42 = vpack.c.bf16 %v499_v38, %v498_v40 }
 0x193   :  { %v490_v4 = vpop.f32.mrf.mxu3 }
 0x194   :  { %v491_v19 = vadd.f32 %v490_v4, %v433_v17 }
 0x195   :  { %v483_v12 = vpop.f32.mrf.mxu0 }
 0x196   :  { %v503_v25 = vmax.f32 %v491_v19, 0.0  ;;  %v484_v26 = vadd.f32 %v483_v12, %v418_v15 }
 0x198   :  { %v500_v32 = vmax.f32 %v484_v26, 0.0  ;;  %v512_v34 = vpack.c.bf16 %v503_v25, %v502_v29 }
 0x19b   :  { %v493_v13 = vpop.f32.mrf.mxu3 }
 0x19c   :  { %v494_v16 = vadd.f32 %v493_v13, %v438_v11 }
 0x19d   :  { %v485_v21 = vpop.f32.mrf.mxu0 }
 0x19e   :  { %v504_v22 = vmax.f32 %v494_v16, 0.0  ;;  %v486_v27 = vadd.f32 %v485_v21, %v423_v24  ;;  %v644_v16 = vpop.permute.xlu1 %643 }
 0x1a0   :  { %v501_v33 = vmax.f32 %v486_v27, 0.0 }
 0x1a2   :  { %v511_v39 = vpack.c.bf16 %v501_v33, %v500_v32 }
 0x1a3   :  { %v495_v18 = vpop.f32.mrf.mxu3 }
 0x1a4   :  { %v496_v20 = vadd.f32 %v495_v18, %v443_v10  ;;  %v646_v18 = vperm.slane %v644_v16, 0 }
 0x1a6   :  { %v505_v23 = vmax.f32 %v496_v20, 0.0 }
 0x1a8   :  { %v513_v28 = vpack.c.bf16 %v505_v23, %v504_v22 }
 0x1aa   :  { %559 = vmatpush.bf16.msra.mxu1 %v513_v28 }
 0x1ae   :  { %560 = vmatpush.bf16.msra.mxu1 %v512_v34 }
 0x1b2   :  { %561 = vmatpush.bf16.msra.mxu1 %v511_v39 }
 0x1b6   :  { %562 = vmatpush.bf16.msra.mxu1 %v510_v42 }
 0x1b9   :  { %689 = vmatmul.msk.bf16.vlgmr.msra.gmra.mxu1 %vm548_vm0, %v700_v43 }
 0x1c9   :  { %690 = vmatmul.msk.bf16.gmra.mxu1 %vm548_vm0, %v701_v44 }
 0x236   :  { %v564_v45 = vpop.f32.mrf.mxu1 }
 0x237   :  { %v565_v56 = vadd.f32 %v564_v45, %v521_v55 }
 0x239   :  { %v574_v60 = vmax.f32 %v565_v56, 0.0 }
 0x23e   :  { %v566_v46 = vpop.f32.mrf.mxu1 }
 0x23f   :  { %v567_v53 = vadd.f32 %v566_v46, %v526_v51 }
 0x241   :  { %v575_v35 = vmax.f32 %v567_v53, 0.0 }
 0x243   :  { %v580_v61 = vpack.c.bf16 %v575_v35, %v574_v60 }
 0x246   :  { %v569_v48 = vpop.f32.mrf.mxu1 }
 0x247   :  { %v570_v50 = vadd.f32 %v569_v48, %v531_v47 }
 0x249   :  { %v576_v57 = vmax.f32 %v570_v50, 0.0 }
 0x24e   :  { %v571_v52 = vpop.f32.mrf.mxu1 }
 0x24f   :  { %v572_v54 = vadd.f32 %v571_v52, %v536_v49 }
 0x251   :  { %v577_v58 = vmax.f32 %v572_v54, 0.0 }
 0x253   :  { %v581_v59 = vpack.c.bf16 %v577_v58, %v576_v57 }
 0x255   :  { %609 = vmatpush.bf16.msra.mxu2 %v581_v59 }
 0x259   :  { %610 = vmatpush.bf16.msra.mxu2 %v580_v61 }
 0x25c   :  { %695 = vmatmul.msk.bf16.vlgmr.msra.gmra.mxu2 %vm599_vm1, %v702_v41 }
 0x2df   :  { %v612_v62 = vpop.f32.mrf.mxu2 }
 0x2e0   :  { %v613_v0 = vadd.f32 %v612_v62, %v587_v63 }
 0x2e2   :  { %v617_v5 = vmax.f32 %v613_v0, 0.0 }
 0x2e4   :  { %v631_v4 = vmul.f32 %v624_v9, %v617_v5 }
 0x2e7   :  { %v614_v2 = vpop.f32.mrf.mxu2 }
 0x2e8   :  { %v615_v6 = vadd.f32 %v614_v2, %v592_v1 }
 0x2ea   :  { %v618_v7 = vmax.f32 %v615_v6, 0.0 }
 0x2ec   :  { %v632_v10 = vmul.f32 %v629_v8, %v618_v7 }
 0x2ee   :  { %v633_v11 = vadd.f32 %v632_v10, %v631_v4 }
 0x2f0   :  { %v634_v12 = vrot.slane %v633_v11, 4 }
 0x2f2   :  { %v635_v13 = vadd.f32 %v634_v12, %v633_v11 }
 0x2f4   :  { %v636_v14 = vrot.slane %v635_v13, 2 }
 0x2f6   :  { %v637_v15 = vadd.f32 %v636_v14, %v635_v13 }
 0x2f8   :  { %v638_v17 = vrot.slane %v637_v15, 1 }
 0x2fa   :  { %v639_v19 = vadd.f32 %v638_v17, %v637_v15 }
 0x2fc   :  { %v647_v20 = vadd.f32 %v646_v18, %v639_v19 }
 0x2fe   :  { %648 = vst [vmem:[#allocation3] sm:$0x1] %v647_v20 }
 0x2ff   :  { %659 = dma.vmem_to_hbm [thread:$0]  %s655_s19, 16, %s657_s21, [#allocation4]  }
 0x300   :  { %770 = dma.done.wait [#allocation4], 16  }
 0x301   :  { %771 = vsyncadd [#allocation4], 4294967280 }
 0x302   :  { %664 = vsyncpa [#allocation4], 1 }

</bundles_post_ra>
